<compile_context>
chip_gen: v7x
topology: tpu7x:2x2x1
jax: 0.10.0
libtpu: 0.0.40
codegen_flags: <defaults>
</compile_context>

<pallas_src>
import functools
import numpy as np
import jax
import jax.numpy as jnp
from jax.experimental import pallas as pl
from jax.experimental.pallas import tpu as pltpu


# ----------------------------------------------------------------------------
# Module configuration
# HighResolutionModule(num_branches=2, blocks=BasicBlock (expansion=1),
#                      num_blocks=[2, 2], num_inchannels=[16, 32],
#                      num_channels=[16, 32], fuse_method='SUM',
#                      multi_scale_output=True, align_corners=True)
# ----------------------------------------------------------------------------
NUM_BRANCHES = 2
NUM_BLOCKS = (2, 2)
NUM_CHANNELS = (16, 32)        # == num_inchannels -> BasicBlock downsample is None
_BN_EPS = 1e-5


# ----------------------------- roll-convention probe ------------------------ #

@functools.lru_cache(maxsize=None)
def _roll_is_numpy_convention():
    """True iff pltpu.roll follows np.roll semantics (out[i] = in[i - shift]).

    Resolved once via a tiny hardware probe and cached; usable from any entry
    point (import, jit trace, or __main__)."""
    def probe(x_ref, o_ref):
        o_ref[...] = pltpu.roll(x_ref[...], shift=1, axis=1)

    x = jnp.broadcast_to(jnp.arange(128, dtype=jnp.float32), (8, 128))
    y = pl.pallas_call(
        probe,
        out_shape=jax.ShapeDtypeStruct((8, 128), jnp.float32),
        in_specs=[pl.BlockSpec(memory_space=pltpu.MemorySpace.VMEM)],
        out_specs=pl.BlockSpec(memory_space=pltpu.MemorySpace.VMEM),
    )(x)
    y = np.asarray(jax.block_until_ready(y))
    # np.roll convention: out[0, 0] == in[0, 127] == 127
    return bool(abs(float(y[0, 0]) - 127.0) < 0.5)


# ----------------------------- in-kernel conv helpers ----------------------- #

def _shift_lanes(x, d, numpy_roll):
    """Return y with y[:, f] = x[:, (f + d) mod M] (wrap masked by the caller)."""
    M = x.shape[-1]
    d = d % M
    if d == 0:
        return x
    shift = (M - d) if numpy_roll else d
    return pltpu.roll(x, shift=shift, axis=1)


def _make_tap_masks(H, W, M):
    """Minimal per-tap validity masks for the per-image flat layout f = h*W + w.

    Center tap -> None; dy==1 taps need only the column mask; dx==1 taps only
    the row mask."""
    flat = jax.lax.broadcasted_iota(jnp.int32, (1, M), 1)
    col = flat % W
    row = flat // W
    masks = {}
    for dy in range(3):
        for dx in range(3):
            conds = []
            if dy == 0:
                conds.append(row >= 1)
            elif dy == 2:
                conds.append(row < H - 1)
            if dx == 0:
                conds.append(col >= 1)
            elif dx == 2:
                conds.append(col < W - 1)
            m = None
            for c in conds:
                m = c if m is None else (m & c)
            masks[(dy, dx)] = m
    return masks


def _tap_operand(x, masks, W, numpy_roll):
    """Build the (9*Cin, M) bf16 operand of a 3x3/stride-1/pad-1 conv GEMM.

    x: (Cin, M) f32, per-image flat layout f = h*W + w."""
    pieces = []
    for dy in range(3):
        for dx in range(3):
            d = (dy - 1) * W + (dx - 1)
            t = _shift_lanes(x, d, numpy_roll)
            m = masks[(dy, dx)]
            if m is not None:
                t = jnp.where(m, t, 0.0)
            pieces.append(t.astype(jnp.bfloat16))
    return jnp.concatenate(pieces, axis=0)


# ----------------------------- fused module kernel -------------------------- #

def _module_kernel(x0_ref, x1_ref, wb0_ref, bb0_ref, wb1_ref, bb1_ref,
                   w01_ref, b01_ref, w10_ref, b10_ref, kup_ref, ssub_ref,
                   y0_ref, y1_ref, *, H0, W0, H1, W1, nb0, nb1, numpy_roll):
    """Whole HighResolutionModule for ONE image (grid axis = batch).

    x0_ref: (1, C0, M0) f32   M0 = H0*W0      x1_ref: (1, C1, M1) f32
    wbX_ref: (2*nbX, CX, 9*CX) bf16 (BN scale folded)   bbX_ref: (2*nbX, CX, 1) f32
    w01_ref: (C0, C1) bf16, b01_ref: (C0, 1) f32        (1x1 conv + BN, fuse 0<-1)
    w10_ref: (C1, 9*C0) bf16, b10_ref: (C1, 1) f32      (3x3 s2 conv + BN, fuse 1<-0)
    kup_ref: (M1, M0) bf16 bilinear matrix, ssub_ref: (M0, M1) bf16 0/1 selection
    """
    x0 = x0_ref[0]                                    # (C0, M0)
    x1 = x1_ref[0]                                    # (C1, M1)

    masks0 = _make_tap_masks(H0, W0, x0.shape[1])
    masks1 = _make_tap_masks(H1, W1, x1.shape[1])

    def conv_bn(x, w, b, masks, W):
        taps = _tap_operand(x, masks, W, numpy_roll)  # (9*Cin, M) bf16
        return jnp.dot(w, taps, preferred_element_type=jnp.float32) + b

    def run_branch(x, w_ref, b_ref, masks, W, nblocks):
        for blk in range(nblocks):                    # BasicBlock, expansion=1
            residual = x
            h = jnp.maximum(conv_bn(x, w_ref[2 * blk], b_ref[2 * blk], masks, W), 0.0)
            h = conv_bn(h, w_ref[2 * blk + 1], b_ref[2 * blk + 1], masks, W)
            x = jnp.maximum(h + residual, 0.0)
        return x

    z0 = run_branch(x0, wb0_ref, bb0_ref, masks0, W0, nb0)   # (C0, M0) f32
    z1 = run_branch(x1, wb1_ref, bb1_ref, masks1, W1, nb1)   # (C1, M1) f32

    # ---- fuse path i = 0: relu(z0 + bilinear_up(bn(conv1x1(z1)))) ----
    t = jnp.dot(w01_ref[...], z1.astype(jnp.bfloat16),
                preferred_element_type=jnp.float32) + b01_ref[...]        # (C0, M1)
    up = jnp.dot(t.astype(jnp.bfloat16), kup_ref[...],
                 preferred_element_type=jnp.float32)                      # (C0, M0)
    y0_ref[0] = jnp.maximum(z0 + up, 0.0)

    # ---- fuse path i = 1: relu(bn(conv3x3_s2(z0)) + z1) ----
    taps0 = _tap_operand(z0, masks0, W0, numpy_roll)                      # (9*C0, M0)
    full = jnp.dot(w10_ref[...], taps0, preferred_element_type=jnp.float32)  # (C1, M0)
    ds = jnp.dot(full.astype(jnp.bfloat16), ssub_ref[...],
                 preferred_element_type=jnp.float32) + b10_ref[...]       # (C1, M1)
    y1_ref[0] = jnp.maximum(ds + z1, 0.0)


# ----------------------------- interpolation / selection matrices ----------- #

@functools.lru_cache(maxsize=None)
def _interp_matrix(n_in, n_out):
    """1-D bilinear interpolation matrix, align_corners=True semantics."""
    m = np.zeros((n_out, n_in), dtype=np.float32)
    if n_out == 1:
        m[0, 0] = 1.0
        return m
    scale = (n_in - 1) / (n_out - 1)
    for i in range(n_out):
        src = i * scale
        i0 = min(int(np.floor(src)), n_in - 1)
        i1 = min(i0 + 1, n_in - 1)
        f = src - i0
        m[i, i0] += 1.0 - f
        m[i, i1] += f
    return m


@functools.lru_cache(maxsize=None)
def _upsample_matrix(h_in, w_in, h_out, w_out):
    """Per-image Kronecker bilinear matrix: (h_in*w_in, h_out*w_out)."""
    # TODO(synk): for large resolutions switch to separable row/col GEMMs; the
    # dense per-image matrix is O((H*W)^2) and would pressure v7x's 64 MiB VMEM.
    wh = _interp_matrix(h_in, h_out)     # (h_out, h_in)
    ww = _interp_matrix(w_in, w_out)     # (w_out, w_in)
    return np.einsum('oh,pw->hwop', wh, ww).reshape(h_in * w_in, h_out * w_out)


@functools.lru_cache(maxsize=None)
def _stride2_select_matrix(h, w):
    """Per-image 0/1 matrix selecting even (h, w) positions: (h*w, h_o*w_o)."""
    h_o = (h - 1) // 2 + 1
    w_o = (w - 1) // 2 + 1
    s = np.zeros((h * w, h_o * w_o), np.float32)
    for ho in range(h_o):
        for wo in range(w_o):
            s[(2 * ho) * w + (2 * wo), ho * w_o + wo] = 1.0
    return s


# ----------------------------- pallas_call wrapper --------------------------- #

def high_resolution_module_forward(prepared, x_list):
    assert len(x_list) == NUM_BRANCHES
    x0, x1 = x_list
    N, C0, H0, W0 = x0.shape
    _, C1, H1, W1 = x1.shape
    assert (H0 - 1) // 2 + 1 == H1 and (W0 - 1) // 2 + 1 == W1, \
        "branch-1 resolution must be the stride-2 downsample of branch-0"
    M0, M1 = H0 * W0, H1 * W1

    # NCHW -> per-image channels-major flat (N, C, H*W): just a reshape.
    x0f = x0.reshape(N, C0, M0)
    x1f = x1.reshape(N, C1, M1)

    kup = jnp.asarray(_upsample_matrix(H1, W1, H0, W0), jnp.bfloat16)    # (M1, M0)
    ssub = jnp.asarray(_stride2_select_matrix(H0, W0), jnp.bfloat16)     # (M0, M1)

    kern = functools.partial(
        _module_kernel, H0=H0, W0=W0, H1=H1, W1=W1,
        nb0=NUM_BLOCKS[0], nb1=NUM_BLOCKS[1],
        numpy_roll=_roll_is_numpy_convention())

    def full_spec(a):
        shp = tuple(a.shape)
        return pl.BlockSpec(shp, lambda n, _nd=len(shp): (0,) * _nd)

    wb0, bb0 = prepared['wb0'], prepared['bb0']
    wb1, bb1 = prepared['wb1'], prepared['bb1']
    w01, b01 = prepared['w01'], prepared['b01']
    w10, b10 = prepared['w10'], prepared['b10']

    y0f, y1f = pl.pallas_call(
        kern,
        out_shape=(jax.ShapeDtypeStruct((N, C0, M0), jnp.float32),
                   jax.ShapeDtypeStruct((N, C1, M1), jnp.float32)),
        grid=(N,),
        in_specs=[
            pl.BlockSpec((1, C0, M0), lambda n: (n, 0, 0)),
            pl.BlockSpec((1, C1, M1), lambda n: (n, 0, 0)),
            full_spec(wb0), full_spec(bb0), full_spec(wb1), full_spec(bb1),
            full_spec(w01), full_spec(b01), full_spec(w10), full_spec(b10),
            full_spec(kup), full_spec(ssub),
        ],
        out_specs=(pl.BlockSpec((1, C0, M0), lambda n: (n, 0, 0)),
                   pl.BlockSpec((1, C1, M1), lambda n: (n, 0, 0))),
        compiler_params=pltpu.CompilerParams(
            dimension_semantics=("parallel",),
            vmem_limit_bytes=32 * 1024 * 1024),
    )(x0f, x1f, wb0, bb0, wb1, bb1, w01, b01, w10, b10, kup, ssub)

    return [y0f.reshape(N, C0, H0, W0), y1f.reshape(N, C1, H1, W1)]


# ----------------------------- parameters ------------------------------------ #

def _fold_bn(gamma, beta, mean, var):
    # TODO(synk): BatchNorm is folded with running statistics (eval mode);
    # training-mode batch-statistics normalization is not reproduced here.
    scale = gamma / jnp.sqrt(var + _BN_EPS)
    bias = beta - mean * scale
    return scale, bias


def _conv_w(key, cout, cin, k):
    return 0.1 * jax.random.normal(key, (cout, cin, k, k), jnp.float32)


def _bn_p(key, c):
    k1, k2, k3, k4 = jax.random.split(key, 4)
    gamma = 1.0 + 0.05 * jax.random.normal(k1, (c,), jnp.float32)
    beta = 0.05 * jax.random.normal(k2, (c,), jnp.float32)
    mean = 0.05 * jax.random.normal(k3, (c,), jnp.float32)
    var = 1.0 + 0.1 * jax.random.uniform(k4, (c,), jnp.float32)
    return _fold_bn(gamma, beta, mean, var)


def init_params(key):
    """Raw parameters (f32 OIHW conv weights + folded BN affine)."""
    raw = {'branches': [], 'fuse': {}}
    for b in range(NUM_BRANCHES):
        C = NUM_CHANNELS[b]
        blocks = []
        for _ in range(NUM_BLOCKS[b]):
            key, k1, k2, k3, k4 = jax.random.split(key, 5)
            blocks.append({
                'w1': _conv_w(k1, C, C, 3), 'bn1': _bn_p(k2, C),
                'w2': _conv_w(k3, C, C, 3), 'bn2': _bn_p(k4, C),
            })
        raw['branches'].append(blocks)
    # fuse_layers[0][1]: Conv1x1(C1->C0, bias=False) + BN(C0)
    key, k1, k2 = jax.random.split(key, 3)
    raw['fuse']['01'] = {'w': _conv_w(k1, NUM_CHANNELS[0], NUM_CHANNELS[1], 1),
                         'bn': _bn_p(k2, NUM_CHANNELS[0])}
    # fuse_layers[1][0]: Conv3x3(C0->C1, stride=2, pad=1, bias=False) + BN(C1)
    key, k1, k2 = jax.random.split(key, 3)
    raw['fuse']['10'] = {'w': _conv_w(k1, NUM_CHANNELS[1], NUM_CHANNELS[0], 3),
                         'bn': _bn_p(k2, NUM_CHANNELS[1])}
    return raw


def _fold_conv_flat(w_oihw, scale):
    """(Cout, Cin, kh, kw) -> (Cout, kh*kw*Cin) bf16 with BN scale folded.

    Column order (dy*3 + dx)*Cin + ci matches the in-kernel tap concatenation."""
    co, ci, kh, kw = w_oihw.shape
    w = w_oihw * scale[:, None, None, None]
    w = jnp.transpose(w, (0, 2, 3, 1)).reshape(co, kh * kw * ci)
    return w.astype(jnp.bfloat16)


def prepare_params(raw):
    """Kernel-ready parameters: BN folded, tap-flat layout, bf16 weights."""
    _roll_is_numpy_convention()        # warm the roll-convention cache eagerly
    prep = {}
    for b in range(NUM_BRANCHES):
        ws, bs = [], []
        for blk in raw['branches'][b]:
            for wk, bnk in (('w1', 'bn1'), ('w2', 'bn2')):
                scale, bias = blk[bnk]
                ws.append(_fold_conv_flat(blk[wk], scale))
                bs.append(bias.reshape(-1, 1))
        prep[f'wb{b}'] = jnp.stack(ws)
        prep[f'bb{b}'] = jnp.stack(bs).astype(jnp.float32)
    s01, b01 = raw['fuse']['01']['bn']
    prep['w01'] = (raw['fuse']['01']['w'][:, :, 0, 0] * s01[:, None]).astype(jnp.bfloat16)
    prep['b01'] = b01.reshape(-1, 1).astype(jnp.float32)
    s10, b10 = raw['fuse']['10']['bn']
    prep['w10'] = _fold_conv_flat(raw['fuse']['10']['w'], s10)
    prep['b10'] = b10.reshape(-1, 1).astype(jnp.float32)
    return prep


# ----------------------------- pure-JAX reference ---------------------------- #

def _ref_conv(x, w, stride, pad):
    return jax.lax.conv_general_dilated(
        x, w, window_strides=(stride, stride),
        padding=((pad, pad), (pad, pad)),
        dimension_numbers=('NCHW', 'OIHW', 'NCHW'),
        precision=jax.lax.Precision.HIGHEST)


def _ref_bn(x, scale, bias):
    return x * scale[None, :, None, None] + bias[None, :, None, None]


def _ref_upsample(x, h_out, w_out):
    wh = jnp.asarray(_interp_matrix(x.shape[2], h_out))
    ww = jnp.asarray(_interp_matrix(x.shape[3], w_out))
    return jnp.einsum('nchw,Hh,Ww->ncHW', x, wh, ww,
                      precision=jax.lax.Precision.HIGHEST)


def _ref_basic_block(x, blk):
    s1, b1 = blk['bn1']
    s2, b2 = blk['bn2']
    out = jax.nn.relu(_ref_bn(_ref_conv(x, blk['w1'], 1, 1), s1, b1))
    out = _ref_bn(_ref_conv(out, blk['w2'], 1, 1), s2, b2)
    return jax.nn.relu(out + x)


def ref_forward(raw, x_list):
    x = []
    for b in range(NUM_BRANCHES):
        h = x_list[b]
        for blk in raw['branches'][b]:
            h = _ref_basic_block(h, blk)
        x.append(h)
    H0, W0 = x[0].shape[2], x[0].shape[3]
    s01, b01 = raw['fuse']['01']['bn']
    up = _ref_bn(_ref_conv(x[1], raw['fuse']['01']['w'], 1, 0), s01, b01)
    up = _ref_upsample(up, H0, W0)
    y0 = jax.nn.relu(x[0] + up)
    s10, b10 = raw['fuse']['10']['bn']
    dn = _ref_bn(_ref_conv(x[0], raw['fuse']['10']['w'], 2, 1), s10, b10)
    y1 = jax.nn.relu(dn + x[1])
    return [y0, y1]


# ----------------------------- main ------------------------------------------ #

if __name__ == "__main__":
    key = jax.random.PRNGKey(0)
    kp, k0, k1 = jax.random.split(key, 3)
    raw = init_params(kp)
    prepared = prepare_params(raw)

    # Branch 0: high-res (N, C0, H, W); branch 1: half-res (N, C1, H/2, W/2).
    x0 = jax.random.normal(k0, (2, NUM_CHANNELS[0], 16, 16), jnp.float32)
    x1 = jax.random.normal(k1, (2, NUM_CHANNELS[1], 8, 8), jnp.float32)

    fwd = jax.jit(high_resolution_module_forward)
    outs = fwd(prepared, [x0, x1])
    outs = [jax.block_until_ready(o) for o in outs]

    assert outs[0].shape == (2, 16, 16, 16) and outs[0].dtype == jnp.float32
    assert outs[1].shape == (2, 32, 8, 8) and outs[1].dtype == jnp.float32

    # Cross-check against a pure-JAX f32 (HIGHEST precision) reference.
    refs = ref_forward(raw, [x0, x1])
    for name, o, r in zip(("y0", "y1"), outs, refs):
        o_np = np.asarray(o)
        r_np = np.asarray(jax.block_until_ready(r))
        assert np.all(np.isfinite(o_np)), f"{name}: non-finite values"
        err = float(np.max(np.abs(o_np - r_np)) / max(float(np.max(np.abs(r_np))), 1.0))
        # bf16 weights/activations/interp matrices are an intentional inference
        # precision choice; tolerance is rel-to-max.
        assert err < 5e-2, f"{name}: mismatch vs reference (rel-to-max err={err:.4f})"

    print("KERNEL_OK")
</pallas_src>

<mosaic_0001>
module attributes {stable_mosaic.version = 11 : i64} {
  func.func @probe(%arg0: memref<8x128xf32, #tpu.memory_space<vmem>>, %arg1: memref<8x128xf32, #tpu.memory_space<vmem>>) attributes {dimension_semantics = [], scalar_prefetch = 0 : i64, scratch_operands = 0 : i64, tpu.core_type = #tpu.core_type<tc>} {
    %c0 = arith.constant 0 : index
    %c0_0 = arith.constant 0 : index
    %0 = vector.load %arg0[%c0, %c0_0] : memref<8x128xf32, #tpu.memory_space<vmem>>, vector<8x128xf32>
    %c1_i32 = arith.constant 1 : i32
    %1 = tpu.dynamic_rotate %0 by %c1_i32 dim 1 : vector<8x128xf32>, i32 -> vector<8x128xf32>
    %c0_1 = arith.constant 0 : index
    %c0_2 = arith.constant 0 : index
    %2 = vector.load %arg1[%c0_1, %c0_2] : memref<8x128xf32, #tpu.memory_space<vmem>>, vector<8x128xf32>
    tpu.vector_store %arg1[%c0_1, %c0_2], %1 {strides = array<i32>} : memref<8x128xf32, #tpu.memory_space<vmem>>, vector<8x128xf32>,
    return
  }
}

</mosaic_0001>

<bundles_post_ra>
// kernel: tpu_custom_call.1
= control target key start
LH: loop header
LB: loop body
LE: loop exit
PB: predicated region body
PF: predicated region fallthrough
CT: control target
= control target key end

     0   :  { %6 = vsyncpa [#allocation3], 0  ;;  %s128_s0 = inlined_call_operand.hbm [shape: f32[8,128], index: 0, kind: input, shape index: {}]   ;;  %s129_s1 = inlined_call_operand.hbm [shape: f32[8,128], index: 1, kind: output, shape index: {}]  }
   0x1   :  { %7 = vsyncpa [#allocation4], 0  ;;  %s91_s6 = smov [#allocation2]   ;;  %s43_s10 = scalar_lea.hbm %s128_s0, 128 }
   0x2   :  { %s14_s7 = sshll.u32 %s91_s6, 4  ;;  %p44_p0 = scmp.ne.s32.totalorder %s128_s0, %s43_s10  ;;  %s15_s7 = int_to_ptr.vmem [resolvable:$true] %s14_s7 }
   0x3   :  { %p47_p1 = scmp.lt.u32.totalorder %s43_s10, %s128_s0 }
   0x5   :  { %p49_p2 = pnand %p47_p1, %p44_p0 }
   0x7   :  { %52 = shalt.err (!%p49_p2)
}
   0x8   :  { %s53_s15 = scalar_lea.vmem %s15_s7, 128  ;;  %p58_p4 = scmp.lt.s32.totalorder %s15_s7, %s15_s7 }
   0x9   :  { %p54_p3 = scmp.ne.s32.totalorder %s15_s7, %s53_s15  ;;  %p59_p5 = scmp.lt.s32.totalorder %s53_s15, %s53_s15 }
   0xb   :  { %p60_p6 = por %p59_p5, %p58_p4 }
   0xd   :  { %p61_p7 = pnand %p60_p6, %p54_p3 }
   0xf   :  { %64 = shalt.err (!%p61_p7)
}
  0x10   :  { %17 = dma.hbm_to_vmem [thread:$0]  %s128_s0, 128, %s15_s7, [#allocation3]  }
  0x11   :  { %87 = dma.done.wait [#allocation3], 128  }
  0x12   :  { %88 = vsyncadd [#allocation3], 4294967168  ;;  %v21_v0 = vld [vmem:[#allocation2] sm:$0xff]  ;;  %s92_s18 = smov 1   ;;  %s93_s19 = smov [#allocation5]  }
  0x13   :  { %22 = vrot.lane.b32.xlu0 %v21_v0, %s92_s18  ;;  %s31_s20 = sshll.u32 %s93_s19, 4  ;;  %s32_s20 = int_to_ptr.vmem [resolvable:$true] %s31_s20 }
  0x14   :  { %s65_s21 = scalar_lea.vmem %s32_s20, 128  ;;  %p70_p9 = scmp.lt.s32.totalorder %s32_s20, %s32_s20 }
  0x15   :  { %p66_p8 = scmp.ne.s32.totalorder %s32_s20, %s65_s21  ;;  %p71_p10 = scmp.lt.s32.totalorder %s65_s21, %s65_s21 }
  0x17   :  { %p72_p11 = por %p71_p10, %p70_p9 }
  0x19   :  { %p73_p12 = pnand %p72_p11, %p66_p8 }
  0x85   :  { %v23_v1 = vpop.permute.xlu0 %22 }
  0x86   :  { %24 = vst [vmem:[#allocation5] sm:$0xff] %v23_v1 }
  0x87   :  { %76 = shalt.err (!%p73_p12)
}
  0x88   :  { %s77_s0 = scalar_lea.hbm %s129_s1, 128 }
  0x89   :  { %p78_p13 = scmp.ne.s32.totalorder %s129_s1, %s77_s0  ;;  %p81_p0 = scmp.lt.u32.totalorder %s77_s0, %s129_s1 }
  0x8b   :  { %p83_p1 = pnand %p81_p0, %p78_p13 }
  0x8d   :  { %86 = shalt.err (!%p83_p1)
}
  0x8e   :  { %34 = dma.vmem_to_hbm [thread:$0]  %s32_s20, 128, %s129_s1, [#allocation4]  }
  0x8f   :  { %89 = dma.done.wait [#allocation4], 128  }
  0x90   :  { %90 = vsyncadd [#allocation4], 4294967168 }
  0x91   :  { %38 = vsyncpa [#allocation3], 1 }
  0x92   :  { %39 = vsyncpa [#allocation4], 1 }

</bundles_post_ra>
